<compile_context>
chip_gen: v5e
topology: v5e:2x2
jax: 0.10.0
libtpu: 0.0.40
codegen_flags: <defaults>
</compile_context>

<pallas_src>
import functools

import jax
import jax.numpy as jnp
import numpy as np
from jax import lax
from jax.experimental import pallas as pl
from jax.experimental.pallas import tpu as pltpu


def _similarity_kernel(x_ref, y_ref, out_ref, *, C, Cy, H, h_chunk, inv_temp,
                       eps, transposed_out):
    # Block shapes:
    #   x_ref  : (Bt, C*H)   bf16/f16/f32 candidate rows (dense, no padding)
    #   y_ref  : (Bt, Cy*H)  reference rows (Cy in {1, C})
    #   out_ref: (C, Bt) f32 if transposed_out else (Bt, C) f32
    bt = x_ref.shape[0]

    def reduce_rows(xbase, ybase, with_yy):
        """Chunked-over-H f32 accumulation of dot / ||x||^2 (/ ||y||^2)."""
        dot = jnp.zeros((bt, 1), jnp.float32)
        xx = jnp.zeros((bt, 1), jnp.float32)
        yy = jnp.zeros((bt, 1), jnp.float32) if with_yy else None
        off = 0
        while off < H:                      # static Python loop (H, h_chunk are ints)
            w = min(h_chunk, H - off)
            xv = x_ref[:, xbase + off:xbase + off + w].astype(jnp.float32)
            yv = y_ref[:, ybase + off:ybase + off + w].astype(jnp.float32)
            dot = dot + jnp.sum(xv * yv, axis=-1, keepdims=True)
            xx = xx + jnp.sum(xv * xv, axis=-1, keepdims=True)
            if with_yy:
                yy = yy + jnp.sum(yv * yv, axis=-1, keepdims=True)
            off += w
        return dot, xx, yy

    yy_shared = None
    if Cy == 1:
        # Reference-vector squared norm is shared across all C candidates.
        yy_shared = jnp.zeros((bt, 1), jnp.float32)
        off = 0
        while off < H:
            w = min(h_chunk, H - off)
            yv = y_ref[:, off:off + w].astype(jnp.float32)
            yy_shared = yy_shared + jnp.sum(yv * yv, axis=-1, keepdims=True)
            off += w

    cols = []
    for c in range(C):                      # static unrolled loop over candidates
        xbase = c * H
        ybase = c * H if Cy == C else 0
        dot, xx, yy = reduce_rows(xbase, ybase, with_yy=(Cy != 1))
        if yy is None:
            yy = yy_shared
        # PyTorch: w12 / sqrt(clamp_min(w1 * w2, eps^2)) -> rsqrt on the EUP.
        cols.append(dot * lax.rsqrt(jnp.maximum(xx * yy, eps * eps)) * inv_temp)

    res = cols[0] if C == 1 else jnp.concatenate(cols, axis=-1)   # (Bt, C)
    if transposed_out:
        out_ref[...] = jnp.transpose(res, (1, 0))                 # lane-dense (C, Bt)
    else:
        out_ref[...] = res


def similarity(x, y, temp=0.05, *, eps=1e-8, block_b=None, h_chunk=512,
               vmem_budget_bytes=24 * 1024 * 1024):
    """Similarity.forward: cosine similarity along the last dim divided by temp.

    x: (B, C, H); y: (B, Cy, H) with Cy in {1, C}.  Returns (B, C) float32.
    """
    B, C, H = x.shape
    By, Cy, Hy = y.shape
    assert By == B and Hy == H and Cy in (1, C), (x.shape, y.shape)

    # Collapse (C, H) into dense rows: avoids (sublane, lane)-tile padding of the
    # small candidate axis.  Contiguous reshape, no data movement.
    x2 = x.reshape(B, C * H)
    y2 = y.reshape(B, Cy * H)

    x_row = C * H * x.dtype.itemsize
    y_row = Cy * H * y.dtype.itemsize
    o_row = C * 4
    per_row_db = 2 * (x_row + y_row + o_row)    # double-buffered bytes per batch row

    if block_b is None:
        max_rows = max(int(vmem_budget_bytes // per_row_db), 1)
        if B <= max_rows:
            if B >= 256:
                # Split into >=2 blocks so the 'parallel' axis can feed both
                # TensorCores on v7x (megacore sharding elsewhere).
                block_b = 128 * pl.cdiv(pl.cdiv(B, 2), 128)
            else:
                block_b = B
        else:
            block_b = (max_rows // 128) * 128
            if block_b == 0:
                block_b = min(B, max((max_rows // 8) * 8, 8))
    block_b = max(1, min(int(block_b), B))

    # Lane-dense output path: emit (C, B), transpose outside.  Requires the
    # block to be the full batch or a multiple of 128 lanes; otherwise fall back
    # to the (B, C) layout (masked stores, only hit with tiny manual tiles).
    transposed_out = (block_b == B) or (block_b % 128 == 0)

    grid = (pl.cdiv(B, block_b),)

    kernel = functools.partial(
        _similarity_kernel, C=C, Cy=Cy, H=H, h_chunk=int(min(h_chunk, H)),
        inv_temp=1.0 / float(temp), eps=float(eps), transposed_out=transposed_out)

    if transposed_out:
        out_shape = jax.ShapeDtypeStruct((C, B), jnp.float32)
        out_spec = pl.BlockSpec((C, block_b), lambda i: (0, i))
    else:
        out_shape = jax.ShapeDtypeStruct((B, C), jnp.float32)
        out_spec = pl.BlockSpec((block_b, C), lambda i: (i, 0))

    footprint = block_b * per_row_db
    vmem_limit = int(max(footprint + (4 << 20), 32 << 20))

    out = pl.pallas_call(
        kernel,
        out_shape=out_shape,
        grid_spec=pltpu.PrefetchScalarGridSpec(
            num_scalar_prefetch=0,
            grid=grid,
            in_specs=[
                pl.BlockSpec((block_b, C * H), lambda i: (i, 0)),
                pl.BlockSpec((block_b, Cy * H), lambda i: (i, 0)),
            ],
            out_specs=out_spec,
        ),
        compiler_params=pltpu.CompilerParams(
            dimension_semantics=("parallel",),
            vmem_limit_bytes=vmem_limit,
        ),
    )(x2, y2)

    return out.T if transposed_out else out


def similarity_reference(x, y, temp=0.05, eps=1e-8):
    """Pure-JAX reference mirroring torch.nn.CosineSimilarity(dim=-1)(x, y) / temp.

    Matches PyTorch's clamp of the *product* of squared norms by eps**2.
    """
    xf = x.astype(jnp.float32)
    yf = jnp.broadcast_to(y.astype(jnp.float32), xf.shape)
    dot = jnp.sum(xf * yf, axis=-1)
    xx = jnp.sum(xf * xf, axis=-1)
    yy = jnp.sum(yf * yf, axis=-1)
    return dot / jnp.maximum(jnp.sqrt(xx * yy), eps) / temp


if __name__ == "__main__":
    key = jax.random.PRNGKey(0)
    kx, ky1, kyc, kx2, ky2 = jax.random.split(key, 5)

    # Ranker-style shapes: x = candidate/context vectors (B, C, H),
    # y = reference vector broadcast over candidates (B, 1, H).
    B, C, H = 16, 4, 128
    x = jax.random.normal(kx, (B, C, H), dtype=jnp.float32).astype(jnp.bfloat16)
    y1 = jax.random.normal(ky1, (B, 1, H), dtype=jnp.float32).astype(jnp.bfloat16)
    yc = jax.random.normal(kyc, (B, C, H), dtype=jnp.float32).astype(jnp.bfloat16)

    # Case 1: broadcast reference (Cy == 1), single block, lane-dense output path.
    out1 = similarity(x, y1, temp=0.05)
    jax.block_until_ready(out1)
    assert out1.shape == (B, C)
    np.testing.assert_allclose(
        np.asarray(out1), np.asarray(similarity_reference(x, y1, temp=0.05)),
        rtol=2e-3, atol=2e-3)

    # Case 2: per-candidate references (Cy == C).
    outc = similarity(x, yc, temp=0.05)
    jax.block_until_ready(outc)
    np.testing.assert_allclose(
        np.asarray(outc), np.asarray(similarity_reference(x, yc, temp=0.05)),
        rtol=2e-3, atol=2e-3)

    # Case 3: manual small tile -> exercises the (B, C) fallback output layout.
    out3 = similarity(x, y1, temp=0.05, block_b=8)
    jax.block_until_ready(out3)
    np.testing.assert_allclose(
        np.asarray(out3), np.asarray(similarity_reference(x, y1, temp=0.05)),
        rtol=2e-3, atol=2e-3)

    # Case 4: multi-block grid (auto block_b=256) with a ragged final block.
    B2 = 384
    x4 = jax.random.normal(kx2, (B2, C, H), dtype=jnp.float32).astype(jnp.bfloat16)
    y4 = jax.random.normal(ky2, (B2, 1, H), dtype=jnp.float32).astype(jnp.bfloat16)
    out4 = similarity(x4, y4, temp=0.05)
    jax.block_until_ready(out4)
    np.testing.assert_allclose(
        np.asarray(out4), np.asarray(similarity_reference(x4, y4, temp=0.05)),
        rtol=2e-3, atol=2e-3)

    print("KERNEL_OK")
</pallas_src>

<mosaic_0001>
module attributes {stable_mosaic.version = 11 : i64} {
  func.func @_similarity_kernel(%arg0: i32, %arg1: memref<16x512xbf16, #tpu.memory_space<vmem>>, %arg2: memref<16x128xbf16, #tpu.memory_space<vmem>>, %arg3: memref<4x16xf32, #tpu.memory_space<vmem>>) attributes {dimension_semantics = [#tpu.dimension_semantics<parallel>], iteration_bounds = array<i64: 1>, scalar_prefetch = 0 : i64, scratch_operands = 0 : i64, tpu.core_type = #tpu.core_type<tc>, window_params = [{transform_indices = @transform_0, window_bounds = array<i64: 16, 512>}, {transform_indices = @transform_1, window_bounds = array<i64: 16, 128>}, {transform_indices = @transform_2, window_bounds = array<i64: 4, 16>}]} {
    %cst = arith.constant 0.000000e+00 : f32
    %0 = vector.broadcast %cst : f32 to vector<16x1xf32>
    %c0 = arith.constant 0 : index
    %c0_0 = arith.constant 0 : index
    %1 = vector.load %arg2[%c0, %c0_0] : memref<16x128xbf16, #tpu.memory_space<vmem>>, vector<16x128xbf16>
    %2 = arith.extf %1 : vector<16x128xbf16> to vector<16x128xf32>
    %3 = arith.mulf %2, %2 : vector<16x128xf32>
    %cst_1 = arith.constant dense<0.000000e+00> : vector<16xf32>
    %4 = vector.multi_reduction <add>, %3, %cst_1 [1] : vector<16x128xf32> to vector<16xf32>
    %5 = vector.shape_cast %4 : vector<16xf32> to vector<16x1xf32>
    %6 = arith.addf %0, %5 : vector<16x1xf32>
    %cst_2 = arith.constant 0.000000e+00 : f32
    %7 = vector.broadcast %cst_2 : f32 to vector<16x1xf32>
    %cst_3 = arith.constant 0.000000e+00 : f32
    %8 = vector.broadcast %cst_3 : f32 to vector<16x1xf32>
    %c0_4 = arith.constant 0 : index
    %c0_5 = arith.constant 0 : index
    %9 = vector.load %arg1[%c0_4, %c0_5] : memref<16x512xbf16, #tpu.memory_space<vmem>>, vector<16x128xbf16>
    %10 = arith.extf %9 : vector<16x128xbf16> to vector<16x128xf32>
    %c0_6 = arith.constant 0 : index
    %c0_7 = arith.constant 0 : index
    %11 = vector.load %arg2[%c0_6, %c0_7] : memref<16x128xbf16, #tpu.memory_space<vmem>>, vector<16x128xbf16>
    %12 = arith.extf %11 : vector<16x128xbf16> to vector<16x128xf32>
    %13 = arith.mulf %10, %12 : vector<16x128xf32>
    %cst_8 = arith.constant dense<0.000000e+00> : vector<16xf32>
    %14 = vector.multi_reduction <add>, %13, %cst_8 [1] : vector<16x128xf32> to vector<16xf32>
    %15 = vector.shape_cast %14 : vector<16xf32> to vector<16x1xf32>
    %16 = arith.addf %7, %15 : vector<16x1xf32>
    %17 = arith.mulf %10, %10 : vector<16x128xf32>
    %cst_9 = arith.constant dense<0.000000e+00> : vector<16xf32>
    %18 = vector.multi_reduction <add>, %17, %cst_9 [1] : vector<16x128xf32> to vector<16xf32>
    %19 = vector.shape_cast %18 : vector<16xf32> to vector<16x1xf32>
    %20 = arith.addf %8, %19 : vector<16x1xf32>
    %21 = arith.mulf %20, %6 : vector<16x1xf32>
    %cst_10 = arith.constant 1.000000e-16 : f32
    %22 = vector.broadcast %cst_10 : f32 to vector<16x1xf32>
    %23 = arith.maximumf %21, %22 : vector<16x1xf32>
    %24 = math.rsqrt %23 : vector<16x1xf32>
    %25 = arith.mulf %16, %24 : vector<16x1xf32>
    %cst_11 = arith.constant 2.000000e+01 : f32
    %26 = vector.broadcast %cst_11 : f32 to vector<16x1xf32>
    %27 = arith.mulf %25, %26 : vector<16x1xf32>
    %cst_12 = arith.constant 0.000000e+00 : f32
    %28 = vector.broadcast %cst_12 : f32 to vector<16x1xf32>
    %cst_13 = arith.constant 0.000000e+00 : f32
    %29 = vector.broadcast %cst_13 : f32 to vector<16x1xf32>
    %c0_14 = arith.constant 0 : index
    %c128 = arith.constant 128 : index
    %30 = vector.load %arg1[%c0_14, %c128] : memref<16x512xbf16, #tpu.memory_space<vmem>>, vector<16x128xbf16>
    %31 = arith.extf %30 : vector<16x128xbf16> to vector<16x128xf32>
    %c0_15 = arith.constant 0 : index
    %c0_16 = arith.constant 0 : index
    %32 = vector.load %arg2[%c0_15, %c0_16] : memref<16x128xbf16, #tpu.memory_space<vmem>>, vector<16x128xbf16>
    %33 = arith.extf %32 : vector<16x128xbf16> to vector<16x128xf32>
    %34 = arith.mulf %31, %33 : vector<16x128xf32>
    %cst_17 = arith.constant dense<0.000000e+00> : vector<16xf32>
    %35 = vector.multi_reduction <add>, %34, %cst_17 [1] : vector<16x128xf32> to vector<16xf32>
    %36 = vector.shape_cast %35 : vector<16xf32> to vector<16x1xf32>
    %37 = arith.addf %28, %36 : vector<16x1xf32>
    %38 = arith.mulf %31, %31 : vector<16x128xf32>
    %cst_18 = arith.constant dense<0.000000e+00> : vector<16xf32>
    %39 = vector.multi_reduction <add>, %38, %cst_18 [1] : vector<16x128xf32> to vector<16xf32>
    %40 = vector.shape_cast %39 : vector<16xf32> to vector<16x1xf32>
    %41 = arith.addf %29, %40 : vector<16x1xf32>
    %42 = arith.mulf %41, %6 : vector<16x1xf32>
    %cst_19 = arith.constant 1.000000e-16 : f32
    %43 = vector.broadcast %cst_19 : f32 to vector<16x1xf32>
    %44 = arith.maximumf %42, %43 : vector<16x1xf32>
    %45 = math.rsqrt %44 : vector<16x1xf32>
    %46 = arith.mulf %37, %45 : vector<16x1xf32>
    %cst_20 = arith.constant 2.000000e+01 : f32
    %47 = vector.broadcast %cst_20 : f32 to vector<16x1xf32>
    %48 = arith.mulf %46, %47 : vector<16x1xf32>
    %cst_21 = arith.constant 0.000000e+00 : f32
    %49 = vector.broadcast %cst_21 : f32 to vector<16x1xf32>
    %cst_22 = arith.constant 0.000000e+00 : f32
    %50 = vector.broadcast %cst_22 : f32 to vector<16x1xf32>
    %c0_23 = arith.constant 0 : index
    %c256 = arith.constant 256 : index
    %51 = vector.load %arg1[%c0_23, %c256] : memref<16x512xbf16, #tpu.memory_space<vmem>>, vector<16x128xbf16>
    %52 = arith.extf %51 : vector<16x128xbf16> to vector<16x128xf32>
    %c0_24 = arith.constant 0 : index
    %c0_25 = arith.constant 0 : index
    %53 = vector.load %arg2[%c0_24, %c0_25] : memref<16x128xbf16, #tpu.memory_space<vmem>>, vector<16x128xbf16>
    %54 = arith.extf %53 : vector<16x128xbf16> to vector<16x128xf32>
    %55 = arith.mulf %52, %54 : vector<16x128xf32>
    %cst_26 = arith.constant dense<0.000000e+00> : vector<16xf32>
    %56 = vector.multi_reduction <add>, %55, %cst_26 [1] : vector<16x128xf32> to vector<16xf32>
    %57 = vector.shape_cast %56 : vector<16xf32> to vector<16x1xf32>
    %58 = arith.addf %49, %57 : vector<16x1xf32>
    %59 = arith.mulf %52, %52 : vector<16x128xf32>
    %cst_27 = arith.constant dense<0.000000e+00> : vector<16xf32>
    %60 = vector.multi_reduction <add>, %59, %cst_27 [1] : vector<16x128xf32> to vector<16xf32>
    %61 = vector.shape_cast %60 : vector<16xf32> to vector<16x1xf32>
    %62 = arith.addf %50, %61 : vector<16x1xf32>
    %63 = arith.mulf %62, %6 : vector<16x1xf32>
    %cst_28 = arith.constant 1.000000e-16 : f32
    %64 = vector.broadcast %cst_28 : f32 to vector<16x1xf32>
    %65 = arith.maximumf %63, %64 : vector<16x1xf32>
    %66 = math.rsqrt %65 : vector<16x1xf32>
    %67 = arith.mulf %58, %66 : vector<16x1xf32>
    %cst_29 = arith.constant 2.000000e+01 : f32
    %68 = vector.broadcast %cst_29 : f32 to vector<16x1xf32>
    %69 = arith.mulf %67, %68 : vector<16x1xf32>
    %cst_30 = arith.constant 0.000000e+00 : f32
    %70 = vector.broadcast %cst_30 : f32 to vector<16x1xf32>
    %cst_31 = arith.constant 0.000000e+00 : f32
    %71 = vector.broadcast %cst_31 : f32 to vector<16x1xf32>
    %c0_32 = arith.constant 0 : index
    %c384 = arith.constant 384 : index
    %72 = vector.load %arg1[%c0_32, %c384] : memref<16x512xbf16, #tpu.memory_space<vmem>>, vector<16x128xbf16>
    %73 = arith.extf %72 : vector<16x128xbf16> to vector<16x128xf32>
    %c0_33 = arith.constant 0 : index
    %c0_34 = arith.constant 0 : index
    %74 = vector.load %arg2[%c0_33, %c0_34] : memref<16x128xbf16, #tpu.memory_space<vmem>>, vector<16x128xbf16>
    %75 = arith.extf %74 : vector<16x128xbf16> to vector<16x128xf32>
    %76 = arith.mulf %73, %75 : vector<16x128xf32>
    %cst_35 = arith.constant dense<0.000000e+00> : vector<16xf32>
    %77 = vector.multi_reduction <add>, %76, %cst_35 [1] : vector<16x128xf32> to vector<16xf32>
    %78 = vector.shape_cast %77 : vector<16xf32> to vector<16x1xf32>
    %79 = arith.addf %70, %78 : vector<16x1xf32>
    %80 = arith.mulf %73, %73 : vector<16x128xf32>
    %cst_36 = arith.constant dense<0.000000e+00> : vector<16xf32>
    %81 = vector.multi_reduction <add>, %80, %cst_36 [1] : vector<16x128xf32> to vector<16xf32>
    %82 = vector.shape_cast %81 : vector<16xf32> to vector<16x1xf32>
    %83 = arith.addf %71, %82 : vector<16x1xf32>
    %84 = arith.mulf %83, %6 : vector<16x1xf32>
    %cst_37 = arith.constant 1.000000e-16 : f32
    %85 = vector.broadcast %cst_37 : f32 to vector<16x1xf32>
    %86 = arith.maximumf %84, %85 : vector<16x1xf32>
    %87 = math.rsqrt %86 : vector<16x1xf32>
    %88 = arith.mulf %79, %87 : vector<16x1xf32>
    %cst_38 = arith.constant 2.000000e+01 : f32
    %89 = vector.broadcast %cst_38 : f32 to vector<16x1xf32>
    %90 = arith.mulf %88, %89 : vector<16x1xf32>
    %91 = tpu.concatenate %27, %48, %69, %90 in 1 : vector<16x1xf32>, vector<16x1xf32>, vector<16x1xf32>, vector<16x1xf32> -> vector<16x4xf32>
    %92 = tpu.transpose %91, [1, 0] : vector<16x4xf32> -> vector<4x16xf32>
    %c0_39 = arith.constant 0 : index
    %c0_40 = arith.constant 0 : index
    %93 = vector.load %arg3[%c0_39, %c0_40] : memref<4x16xf32, #tpu.memory_space<vmem>>, vector<4x16xf32>
    tpu.vector_store %arg3[%c0_39, %c0_40], %92 {strides = array<i32>} : memref<4x16xf32, #tpu.memory_space<vmem>>, vector<4x16xf32>,
    return
  }
  func.func @transform_0(%arg0: i32) -> (i32, i32) {
    %c0_i32 = arith.constant 0 : i32
    %c0_i32_0 = arith.constant 0 : i32
    return %arg0, %c0_i32 : i32, i32
  }
  func.func @transform_1(%arg0: i32) -> (i32, i32) {
    %c0_i32 = arith.constant 0 : i32
    %c0_i32_0 = arith.constant 0 : i32
    return %arg0, %c0_i32 : i32, i32
  }
  func.func @transform_2(%arg0: i32) -> (i32, i32) {
    %c0_i32 = arith.constant 0 : i32
    %c0_i32_0 = arith.constant 0 : i32
    return %c0_i32, %arg0 : i32, i32
  }
}

</mosaic_0001>

<bundles_post_ra>
// kernel: tpu_custom_call.1
= control target key start
LH: loop header
LB: loop body
LE: loop exit
PB: predicated region body
PF: predicated region fallthrough
CT: control target
= control target key end

     0   :  { %7 = vsyncpa [#allocation3], 0  ;;  %s516_s0 = inlined_call_operand.hbm [shape: bf16[16,512], index: 0, kind: input, shape index: {}]   ;;  %s517_s1 = inlined_call_operand.hbm [shape: bf16[16,128], index: 1, kind: input, shape index: {}]   ;;  %s518_s2 = inlined_call_operand.hbm [shape: f32[4,16], index: 2, kind: output, shape index: {}]  }
   0x1   :  { %8 = vsyncpa [#allocation6], 0 }
   0x2   :  { %9 = vsyncpa [#allocation4], 0  ;;  %s14_s11 = sshll.u32 %s516_s0, 4  ;;  %s415_s12 = smov [#allocation2]   ;;  %s15_s11 = int_to_ptr.hbm [resolvable:$true] %s14_s11 }
   0x3   :  { %s16_s13 = sshll.u32 %s415_s12, 4  ;;  %s27_s16 = sshll.u32 %s517_s1, 4  ;;  %s17_s13 = int_to_ptr.vmem [resolvable:$true] %s16_s13  ;;  %s28_s16 = int_to_ptr.hbm [resolvable:$true] %s27_s16 }
   0x4   :  { %s416_s17 = smov 256   ;;  %s417_s18 = smov 16  }
   0x5   :  { %22 = dma.hbm_to_vmem [thread:$0]  %s15_s11, 512, %s17_s13, [#allocation3], %s416_s17, %s416_s17, %s417_s18  }
   0x6   :  { %s418_s19 = smov [#allocation5]   ;;  %s419_s21 = smov 64  }
   0x7   :  { %s29_s20 = sshll.u32 %s418_s19, 4  ;;  %s420_s22 = smov 4   ;;  %s30_s20 = int_to_ptr.vmem [resolvable:$true] %s29_s20 }
   0x8   :  { %35 = dma.hbm_to_vmem [thread:$0]  %s28_s16, 128, %s30_s20, [#allocation6], %s419_s21, %s419_s21, %s420_s22  }
   0x9   :  { %409 = dma.done.wait [#allocation3], 512  }
   0xa   :  { %410 = vsyncadd [#allocation3], 4294966784 }
   0xb   :  { %411 = dma.done.wait [#allocation6], 128  }
   0xc   :  { %412 = vsyncadd [#allocation6], 4294967168  ;;  %v200_v0 = vld [vmem:[#allocation2 + $0xc] sm:$0xff]   ;;  %v104_v1 = vld [vmem:[#allocation2 + $0x4] sm:$0xff]   ;;  %vm248_vm11 = vcmask 7168   ;;  %vm251_vm13 = vcmask 15360  }
   0xd   :  { %v310_v2 = vld [vmem:[#allocation5] sm:$0xff]   ;;  %v202_v3 = vunpack.c.l.bf16 %v200_v0  ;;  %v106_v4 = vunpack.c.l.bf16 %v104_v1  ;;  %v154_v10 = vunpack.c.h.bf16 %v104_v1  ;;  %v105_v16 = vld [vmem:[#allocation2 + $0x14] sm:$0xff]   ;;  %v59_v19 = vunpack.c.h.bf16 %v200_v0  ;;  %v201_v23 = vld [vmem:[#allocation2 + $0x1c] sm:$0xf]  ;;  %s421_s0 = smov [#allocation7]   ;;  %s298_s25 = sshll.u32 %s518_s2, 4  ;;  %s299_s25 = int_to_ptr.hbm [resolvable:$true] %s298_s25 }
   0xe   :  { %v311_v5 = vunpack.c.l.bf16 %v310_v2  ;;  %v56_v9 = vld [vmem:[#allocation2] sm:$0xf]  ;;  %v312_v11 = vunpack.c.h.bf16 %v310_v2  ;;  %v107_v17 = vunpack.c.l.bf16 %v105_v16  ;;  %v155_v18 = vunpack.c.h.bf16 %v105_v16  ;;  %s296_s1 = sshll.u32 %s421_s0, 4  ;;  %s297_s1 = int_to_ptr.vmem [resolvable:$true] %s296_s1 }
   0xf   :  { %v212_v6 = vmul.f32 %v202_v3, %v202_v3  ;;  %v116_v7 = vmul.f32 %v106_v4, %v106_v4  ;;  %v58_v12 = vunpack.c.l.bf16 %v56_v9  ;;  %v164_v13 = vmul.f32 %v154_v10, %v154_v10 }
  0x10   :  { %v48_v8 = vmul.f32 %v311_v5, %v311_v5  ;;  %v49_v14 = vmul.f32 %v312_v11, %v312_v11  ;;  %v117_v20 = vmul.f32 %v107_v17, %v107_v17  ;;  %v165_v21 = vmul.f32 %v155_v18, %v155_v18 }
  0x11   :  { %214 = vadd.xlane.f32.xlu2 %v212_v6  ;;  %118 = vadd.xlane.f32.xlu1 %v116_v7  ;;  %v68_v15 = vmul.f32 %v58_v12, %v58_v12  ;;  %v69_v22 = vmul.f32 %v59_v19, %v59_v19  ;;  %v203_v24 = vunpack.c.l.bf16 %v201_v23  ;;  %v108_v25 = vmul.f32 %v311_v5, %v106_v4 }
  0x12   :  { %50 = vadd.xlane.f32.xlu0 %v48_v8  ;;  %v60_v26 = vmul.f32 %v311_v5, %v58_v12  ;;  %v204_v28 = vmul.f32 %v311_v5, %v202_v3  ;;  %v61_v29 = vmul.f32 %v312_v11, %v59_v19  ;;  %v156_v30 = vmul.f32 %v311_v5, %v154_v10 }
  0x13   :  { %v213_v27 = vmul.f32 %v203_v24, %v203_v24  ;;  %v157_v31 = vmul.f32 %v312_v11, %v155_v18  ;;  %v205_v32 = vmul.f32 %v312_v11, %v203_v24  ;;  %v109_v33 = vmul.f32 %v312_v11, %v107_v17 }
  0x14   :  { %vm254_vm14 = vcmask 23552  }
  0x19   :  { %166 = vadd.xlane.f32.xlu1 %v164_v13  ;;  %52 = vadd.xlane.f32.xlu2 %v49_v14 }
  0x1a   :  { %70 = vadd.xlane.f32.xlu0 %v68_v15 }
  0x21   :  { %120 = vadd.xlane.f32.xlu1 %v117_v20  ;;  %168 = vadd.xlane.f32.xlu2 %v165_v21 }
  0x22   :  { %72 = vadd.xlane.f32.xlu0 %v69_v22 }
  0x29   :  { %110 = vadd.xlane.f32.xlu2 %v108_v25  ;;  %62 = vadd.xlane.f32.xlu1 %v60_v26 }
  0x2a   :  { %216 = vadd.xlane.f32.xlu0 %v213_v27 }
  0x31   :  { %206 = vadd.xlane.f32.xlu1 %v204_v28  ;;  %64 = vadd.xlane.f32.xlu2 %v61_v29 }
  0x32   :  { %158 = vadd.xlane.f32.xlu0 %v156_v30 }
  0x39   :  { %160 = vadd.xlane.f32.xlu1 %v157_v31  ;;  %208 = vadd.xlane.f32.xlu2 %v205_v32 }
  0x3a   :  { %112 = vadd.xlane.f32.xlu0 %v109_v33 }
  0x84   :  { %v215_v34 = vpop.xlane.xlu2 %214  ;;  %v119_v35 = vpop.xlane.xlu1 %118 }
  0x85   :  { %v51_v36 = vpop.xlane.xlu0 %50 }
  0x86   :  { %v124_v37 = vmul.f32 %v119_v35, %v51_v36  ;;  %v220_v38 = vmul.f32 %v215_v34, %v51_v36 }
  0x88   :  { %v126_v39 = vmax.f32 %v124_v37, 1e-16  ;;  %v443_v40 = vmax.f32 %v220_v38, 1e-16 }
  0x8a   :  { %321 = vrsqrt.f32 %v126_v39  ;;  %vm134_vm1 = vweird.f32 %v126_v39  ;;  %vm230_vm8 = vweird.f32 %v443_v40 }
  0x8b   :  { %323 = vrsqrt.f32 %v443_v40 }
  0x8c   :  { %v167_v41 = vpop.xlane.xlu1 %166  ;;  %v53_v42 = vpop.xlane.xlu2 %52 }
  0x8d   :  { %v172_v43 = vmul.f32 %v167_v41, %v51_v36  ;;  %v71_v44 = vpop.xlane.xlu0 %70 }
  0x8e   :  { %v76_v45 = vmul.f32 %v71_v44, %v51_v36 }
  0x8f   :  { %v446_v46 = vmax.f32 %v172_v43, 1e-16 }
  0x90   :  { %v322_v47 = vpop.eup %321  ;;  %v78_v48 = vmax.f32 %v76_v45, 1e-16 }
  0x91   :  { %v448_v49 = vpop.eup %323  ;;  %v129_v50 = vmul.f32 %v322_v47, %v126_v39  ;;  %325 = vrsqrt.f32 %v446_v46  ;;  %vm135_vm0 = vweird.f32 %v322_v47  ;;  %vm182_vm10 = vweird.f32 %v446_v46 }
  0x92   :  { %v225_v51 = vmul.f32 %v448_v49, %v443_v40  ;;  %327 = vrsqrt.f32 %v78_v48  ;;  %vm86_vm2 = vweird.f32 %v78_v48  ;;  %vm136_vm3 = vmor %vm134_vm1, %vm135_vm0  ;;  %vm231_vm5 = vweird.f32 %v448_v49 }
  0x93   :  { %v130_v52 = vmul.f32 %v322_v47, %v129_v50  ;;  %vm232_vm9 = vmor %vm230_vm8, %vm231_vm5 }
  0x94   :  { %v121_v53 = vpop.xlane.xlu1 %120  ;;  %v169_v54 = vpop.xlane.xlu2 %168  ;;  %v226_v55 = vmul.f32 %v448_v49, %v225_v51 }
  0x95   :  { %v125_v56 = vmul.f32 %v121_v53, %v53_v42  ;;  %v173_v57 = vmul.f32 %v169_v54, %v53_v42  ;;  %v73_v58 = vpop.xlane.xlu0 %72  ;;  %v131_v59 = vmul.f32 0.5, %v130_v52 }
  0x96   :  { %v77_v60 = vmul.f32 %v73_v58, %v53_v42  ;;  %v227_v4 = vmul.f32 0.5, %v226_v55 }
  0x97   :  { %v454_v61 = vpop.eup %325  ;;  %v456_v62 = vmax.f32 %v125_v56, 1e-16  ;;  %v458_v63 = vmax.f32 %v173_v57, 1e-16  ;;  %v132_v3 = vsub.f32 1.5, %v131_v59 }
  0x98   :  { %v328_v0 = vpop.eup %327  ;;  %v177_v1 = vmul.f32 %v454_v61, %v446_v46  ;;  %v462_v2 = vmax.f32 %v77_v60, 1e-16  ;;  %v228_v11 = vsub.f32 1.5, %v227_v4  ;;  %vm183_vm6 = vweird.f32 %v454_v61 }
  0x99   :  { %v81_v5 = vmul.f32 %v328_v0, %v78_v48  ;;  %329 = vrsqrt.f32 %v456_v62  ;;  %v133_v9 = vmul.f32 %v322_v47, %v132_v3  ;;  %vm87_vm4 = vweird.f32 %v328_v0  ;;  %vm184_vm12 = vmor %vm182_vm10, %vm183_vm6 }
  0x9a   :  { %v178_v6 = vmul.f32 %v454_v61, %v177_v1  ;;  %331 = vrsqrt.f32 %v458_v63  ;;  %v229_v23 = vmul.f32 %v448_v49, %v228_v11  ;;  %vm88_vm7 = vmor %vm86_vm2, %vm87_vm4  ;;  %vm96_vm0 = vweird.f32 %v462_v2 }
  0x9b   :  { %v82_v7 = vmul.f32 %v328_v0, %v81_v5  ;;  %333 = vrsqrt.f32 %v462_v2  ;;  %v137_v21 = vsel %vm136_vm3, %v322_v47, %v133_v9  ;;  %vm144_vm4 = vweird.f32 %v456_v62 }
  0x9c   :  { %v179_v8 = vmul.f32 0.5, %v178_v6  ;;  %v63_v10 = vpop.xlane.xlu1 %62  ;;  %v111_v14 = vpop.xlane.xlu2 %110  ;;  %v233_v37 = vsel %vm232_vm9, %v448_v49, %v229_v23  ;;  %vm192_vm5 = vweird.f32 %v458_v63 }
  0x9d   :  { %v83_v12 = vmul.f32 0.5, %v82_v7  ;;  %v217_v13 = vpop.xlane.xlu0 %216  ;;  %v148_v26 = vmul.f32 %v137_v21, %v111_v14 }
  0x9e   :  { %v221_v15 = vmul.f32 %v217_v13, %v53_v42  ;;  %v180_v16 = vsub.f32 1.5, %v179_v8 }
  0x9f   :  { %v468_v17 = vpop.eup %329  ;;  %v84_v18 = vsub.f32 1.5, %v83_v12  ;;  %v150_v39 = vmul.f32 20.0, %v148_v26 }
  0xa0   :  { %v472_v19 = vpop.eup %331  ;;  %v139_v20 = vmul.f32 %v468_v17, %v456_v62  ;;  %v476_v22 = vmax.f32 %v221_v15, 1e-16  ;;  %v181_v28 = vmul.f32 %v454_v61, %v180_v16  ;;  %vm145_vm1 = vweird.f32 %v468_v17 }
  0xa1   :  { %v334_v24 = vpop.eup %333  ;;  %v187_v25 = vmul.f32 %v472_v19, %v458_v63  ;;  %v85_v27 = vmul.f32 %v328_v0, %v84_v18  ;;  %vm193_vm2 = vweird.f32 %v472_v19  ;;  %vm146_vm6 = vmor %vm144_vm4, %vm145_vm1 }
  0xa2   :  { %v140_v29 = vmul.f32 %v468_v17, %v139_v20  ;;  %v91_v30 = vmul.f32 %v334_v24, %v462_v2  ;;  %335 = vrsqrt.f32 %v476_v22  ;;  %v185_v41 = vsel %vm184_vm12, %v454_v61, %v181_v28 }
  0xa3   :  { %v188_v31 = vmul.f32 %v472_v19, %v187_v25  ;;  %v89_v32 = vsel %vm88_vm7, %v328_v0, %v85_v27  ;;  %vm97_vm15 = vweird.f32 %v334_v24  ;;  %vm194_vm7 = vmor %vm192_vm5, %vm193_vm2  ;;  %vm240_vm9 = vweird.f32 %v476_v22 }
  0xa4   :  { %v141_v33 = vmul.f32 0.5, %v140_v29  ;;  %v92_v34 = vmul.f32 %v334_v24, %v91_v30  ;;  %v100_v35 = vmul.f32 %v89_v32, %v63_v10  ;;  %v207_v36 = vpop.xlane.xlu1 %206  ;;  %v65_v48 = vpop.xlane.xlu2 %64  ;;  %vm98_vm3 = vmor %vm96_vm0, %vm97_vm15  ;;  %vm289_vm12 = vcmask 125952  }
  0xa5   :  { %v189_v38 = vmul.f32 0.5, %v188_v31  ;;  %v244_v40 = vmul.f32 %v233_v37, %v207_v36  ;;  %v159_v42 = vpop.xlane.xlu0 %158 }
  0xa6   :  { %v93_v43 = vmul.f32 0.5, %v92_v34  ;;  %v102_v44 = vmul.f32 20.0, %v100_v35  ;;  %v196_v45 = vmul.f32 %v185_v41, %v159_v42  ;;  %v142_v46 = vsub.f32 1.5, %v141_v33 }
  0xa7   :  { %v246_v47 = vmul.f32 20.0, %v244_v40  ;;  %v190_v50 = vsub.f32 1.5, %v189_v38 }
  0xa8   :  { %v336_v51 = vpop.eup %335  ;;  %v198_v49 = vmul.f32 20.0, %v196_v45  ;;  %v94_v52 = vsub.f32 1.5, %v93_v43  ;;  %v249_v53 = vsel %vm248_vm11, %v102_v44, %v150_v39  ;;  %v143_v55 = vmul.f32 %v468_v17, %v142_v46 }
  0xa9   :  { %v235_v54 = vmul.f32 %v336_v51, %v476_v22  ;;  %v191_v58 = vmul.f32 %v472_v19, %v190_v50  ;;  %vm241_vm8 = vweird.f32 %v336_v51 }
  0xaa   :  { %v95_v56 = vmul.f32 %v334_v24, %v94_v52  ;;  %v252_v57 = vsel %vm251_vm13, %v249_v53, %v198_v49  ;;  %v147_v2 = vsel %vm146_vm6, %v468_v17, %v143_v55  ;;  %vm242_vm10 = vmor %vm240_vm9, %vm241_vm8 }
  0xab   :  { %v236_v59 = vmul.f32 %v336_v51, %v235_v54  ;;  %v255_v60 = vsel %vm254_vm14, %v252_v57, %v246_v47  ;;  %v195_v5 = vsel %vm194_vm7, %v472_v19, %v191_v58 }
  0xac   :  { %v99_v61 = vsel %vm98_vm3, %v334_v24, %v95_v56  ;;  %257 = vxpose.xlu0.b32.start [1/2] (short) (narrow) %v255_v60, 8  ;;  %v161_v0 = vpop.xlane.xlu1 %160  ;;  %v209_v62 = vpop.xlane.xlu2 %208 }
  0xad   :  { %v237_v1 = vmul.f32 0.5, %v236_v59  ;;  %v113_v3 = vpop.xlane.xlu0 %112  ;;  %v101_v4 = vmul.f32 %v99_v61, %v65_v48  ;;  %v197_v7 = vmul.f32 %v195_v5, %v161_v0 }
  0xae   :  { %v149_v6 = vmul.f32 %v147_v2, %v113_v3 }
  0xaf   :  { %v238_v8 = vsub.f32 1.5, %v237_v1  ;;  %v103_v63 = vmul.f32 20.0, %v101_v4  ;;  %v199_v11 = vmul.f32 20.0, %v197_v7 }
  0xb0   :  { %v151_v9 = vmul.f32 20.0, %v149_v6 }
  0xb1   :  { %v239_v10 = vmul.f32 %v336_v51, %v238_v8 }
  0xb2   :  { %v250_v13 = vsel %vm248_vm11, %v103_v63, %v151_v9 }
  0xb3   :  { %v243_v12 = vsel %vm242_vm10, %v336_v51, %v239_v10  ;;  %v253_v16 = vsel %vm251_vm13, %v250_v13, %v199_v11 }
  0xb4   :  { %v245_v14 = vmul.f32 %v243_v12, %v209_v62 }
  0xb6   :  { %v247_v15 = vmul.f32 20.0, %v245_v14 }
  0xb8   :  { %v256_v17 = vsel %vm254_vm14, %v253_v16, %v247_v15 }
  0xb9   :  { %258 = vxpose.xlu0.b32.end [2/2] (short) (narrow) %v256_v17, 8 }
 0x155   :  { %v273_v18 = vpop.trf.xlu0 }
 0x156   :  { %290 = vst.msk [vmem:[#allocation7] sm:$0xf] %vm289_vm12, %v273_v18 }
 0x157   :  { %301 = dma.vmem_to_hbm [thread:$0]  %s297_s1, 64, %s299_s25, [#allocation4]  }
 0x158   :  { %413 = dma.done.wait [#allocation4], 64  }
 0x159   :  { %414 = vsyncadd [#allocation4], 4294967232 }
 0x15a   :  { %306 = vsyncpa [#allocation3], 1 }
 0x15b   :  { %307 = vsyncpa [#allocation6], 1 }
 0x15c   :  { %308 = vsyncpa [#allocation4], 1 }

</bundles_post_ra>
